<compile_context>
chip_gen: v5e
topology: v5e:2x2
jax: 0.10.0
libtpu: 0.0.40
codegen_flags: <defaults>
</compile_context>

<pallas_src>
import math

import jax
import jax.numpy as jnp
from jax.experimental import pallas as pl
from jax.experimental.pallas import tpu as pltpu

_VMEM_TILE_BUDGET = 24 << 20   # double-buffered per-step footprint target


def _pick_tile_r(R, C, n_res, batch):
    """Largest legal row-tile over the (time-rows) axis R.

    Legal tile: a multiple of 8 that divides R, or R itself (full dim).
    Bounded so 2*(2N+2)*tile_r*C*4 bytes stays within the VMEM budget, and
    capped at R//2 when batch == 1 so the grid keeps >= 2 steps (2 TCs).
    """
    per_row = 2 * (2 * n_res + 2) * C * 4
    max_r = max(_VMEM_TILE_BUDGET // per_row, 1)
    if R % 8 != 0:
        return R                      # full-extent row block is the only legal choice
    cap = max_r
    if batch == 1 and R >= 16:
        cap = min(cap, R // 2)
    cap = max(cap, 8)
    best = 8
    for d in range(8, min(R, cap) + 1, 8):
        if R % d == 0:
            best = d
    return best


def adaptive_learnable_resonance(f0, resonance_freqs, resonance_gains, *, tile_r=None):
    """Pallas forward of AdaptiveLearnableResonance.

    Args:
      f0: (B, T, 1) or (B, T) fundamental frequency.
      resonance_freqs, resonance_gains: (B, N, T) parameters (native PyTorch
        layout, NOT transposed).
      tile_r: optional row-tile override (must divide T//128 and be a
        multiple of 8, or equal it).

    Returns:
      (B, 1, T) combined wave (float32), matching `combined_wave.unsqueeze(1)`.
    """
    if f0.ndim == 3:
        f0 = jnp.squeeze(f0, axis=-1)
    B, T = f0.shape
    N = resonance_freqs.shape[1]

    # Lane-dense view of the time axis.  C=128 keeps every row a full lane
    # group; if T is not lane-aligned fall back to a single full-extent row.
    # TODO(synk): when T is short and B is large, per-grid-step work is small;
    # batching several batch rows per step would need a (tile_b, N, tile_r, C)
    # block and per-n strided ref slices.
    C = 128 if T % 128 == 0 else T
    R = T // C

    if tile_r is not None:
        if R % tile_r != 0 or (tile_r % 8 != 0 and tile_r != R):
            tile_r = None
    if tile_r is None:
        tile_r = _pick_tile_r(R, C, N, B)
    grid = (B, R // tile_r)

    # Metadata-only views (contiguous trailing axis split; zero HBM traffic).
    f0_v = f0.reshape(B, R, C)
    freqs_v = resonance_freqs.reshape(B, N, R, C)
    gains_v = resonance_gains.reshape(B, N, R, C)

    # t = linspace(0, 1, T)  ->  t[k] = k / (T - 1);  fold 2*pi in once.
    t_scale = float(2.0 * math.pi / max(T - 1, 1))

    def kernel(f0_ref, freqs_ref, gains_ref, out_ref):
        # f0_ref: (tile_r, C); freqs/gains: (N, tile_r, C); out: (tile_r, C).
        j = pl.program_id(1)
        # Exact int32 global time index, one f32 cast + one scale per tile.
        t_idx = (jax.lax.broadcasted_iota(jnp.int32, (tile_r, C), 0) * C
                 + jax.lax.broadcasted_iota(jnp.int32, (tile_r, C), 1)
                 + j * (tile_r * C))
        t_scaled = t_idx.astype(jnp.float32) * jnp.float32(t_scale)

        acc = jnp.sin(f0_ref[...].astype(jnp.float32) * t_scaled)   # base wave
        for n in range(N):                                          # unrolled
            acc = acc + gains_ref[n].astype(jnp.float32) * jnp.sin(
                freqs_ref[n].astype(jnp.float32) * t_scaled)
        out_ref[...] = acc

    # Double-buffered footprint (f32 upper bound) + headroom for the limit.
    fp_bytes = 2 * (2 * N + 2) * tile_r * C * 4
    vmem_limit = int(min(max(fp_bytes + (4 << 20), 32 << 20), 64 << 20))

    f0_b = B * T * jnp.dtype(f0.dtype).itemsize
    par_b = N * B * T * (jnp.dtype(resonance_freqs.dtype).itemsize
                         + jnp.dtype(resonance_gains.dtype).itemsize)
    cost = pl.CostEstimate(
        flops=(3 * N + 2) * B * T,
        transcendentals=(N + 1) * B * T,
        bytes_accessed=f0_b + par_b + B * T * 4,
    )

    out_3d = pl.pallas_call(
        kernel,
        out_shape=jax.ShapeDtypeStruct((B, R, C), jnp.float32),
        grid=grid,
        in_specs=[
            pl.BlockSpec((None, tile_r, C), lambda b, j: (b, j, 0)),
            pl.BlockSpec((None, N, tile_r, C), lambda b, j: (b, 0, j, 0)),
            pl.BlockSpec((None, N, tile_r, C), lambda b, j: (b, 0, j, 0)),
        ],
        out_specs=pl.BlockSpec((None, tile_r, C), lambda b, j: (b, j, 0)),
        compiler_params=pltpu.CompilerParams(
            dimension_semantics=("parallel", "parallel"),
            vmem_limit_bytes=vmem_limit),
        cost_estimate=cost,
    )(f0_v, freqs_v, gains_v)

    # PyTorch's `combined_wave.unsqueeze(1)` — metadata-only reshape; the
    # kernel's store path stays unmasked / lane-dense.
    return out_3d.reshape(B, 1, T)


def init_resonance_params(key, batch_size, n_resonances, time_steps,
                          freq_range=(500.0, 2000.0)):
    """Deterministic re-implementation of initialize_resonance_params."""
    k_f, k_g = jax.random.split(key)
    freqs = (jax.random.uniform(k_f, (batch_size, n_resonances, time_steps),
                                dtype=jnp.float32)
             * (freq_range[1] - freq_range[0]) + freq_range[0])
    gains = jax.random.uniform(k_g, (batch_size, n_resonances, time_steps),
                               dtype=jnp.float32) * 0.1
    return freqs, gains


def _reference(f0, freqs, gains):
    """Pure-JAX reference mirroring the PyTorch forward."""
    if f0.ndim == 3:
        f0 = jnp.squeeze(f0, axis=-1)
    B, T = f0.shape
    t = jnp.tile(jnp.linspace(0.0, 1.0, T, dtype=jnp.float32)[None, :], (B, 1))
    base = jnp.sin(2 * jnp.pi * f0 * t)
    res = jnp.zeros_like(base)
    for n in range(freqs.shape[1]):
        res = res + gains[:, n, :] * jnp.sin(2 * jnp.pi * freqs[:, n, :] * t)
    return (base + res)[:, None, :]


if __name__ == "__main__":
    B, T, N_RES = 2, 2048, 3
    key = jax.random.PRNGKey(0)
    k_f0, k_params = jax.random.split(key)

    # f0 in a plausible pitch range, shape (B, T, 1) as in the module docstring.
    f0 = jax.random.uniform(k_f0, (B, T, 1), dtype=jnp.float32) * 300.0 + 100.0
    freqs, gains = init_resonance_params(k_params, B, N_RES, T)

    # tile_r=8 forces a multi-step grid over the time-row axis so the tiled
    # global-index math (program_id(1)) is exercised at this small demo size.
    out = adaptive_learnable_resonance(f0, freqs, gains, tile_r=8)
    out = jax.block_until_ready(out)

    ref = _reference(f0, freqs, gains)
    assert out.shape == (B, 1, T), out.shape

    # Tolerance note: sin arguments reach ~2*pi*2000 ~ 1.26e4, where a single
    # f32 ULP of the argument moves sin by ~1e-3.  The kernel's
    # f * (2*pi*t/(T-1)) grouping rounds differently from the reference's
    # 2*pi*f*t with linspace, and Mosaic vs XLA use different sin range
    # reductions, so ~1e-3-level deviations are expected rounding, not bugs.
    # 2e-2 abs is far below the O(1) signal and still catches any real
    # indexing / accumulation error.
    max_err = float(jnp.max(jnp.abs(out - ref)))
    assert jnp.allclose(out, ref, atol=2e-2, rtol=0.0), f"max abs err {max_err}"

    print("KERNEL_OK")
</pallas_src>

<mosaic_0001>
module attributes {stable_mosaic.version = 11 : i64} {
  func.func @kernel(%arg0: i32, %arg1: i32, %arg2: memref<1x8x128xf32, #tpu.memory_space<vmem>>, %arg3: memref<1x3x8x128xf32, #tpu.memory_space<vmem>>, %arg4: memref<1x3x8x128xf32, #tpu.memory_space<vmem>>, %arg5: memref<1x8x128xf32, #tpu.memory_space<vmem>>) attributes {dimension_semantics = [#tpu.dimension_semantics<parallel>, #tpu.dimension_semantics<parallel>], iteration_bounds = array<i64: 2, 2>, scalar_prefetch = 0 : i64, scratch_operands = 0 : i64, tpu.core_type = #tpu.core_type<tc>, window_params = [{transform_indices = @transform_0, window_bounds = array<i64: 1, 8, 128>}, {transform_indices = @transform_1, window_bounds = array<i64: 1, 3, 8, 128>}, {transform_indices = @transform_2, window_bounds = array<i64: 1, 3, 8, 128>}, {transform_indices = @transform_3, window_bounds = array<i64: 1, 8, 128>}]} {
    %0 = tpu.iota {dimensions = array<i32: 0>} : vector<8x128xi32>
    %c128_i32 = arith.constant 128 : i32
    %1 = vector.broadcast %c128_i32 : i32 to vector<8x128xi32>
    %2 = arith.muli %0, %1 : vector<8x128xi32>
    %3 = tpu.iota {dimensions = array<i32: 1>} : vector<8x128xi32>
    %4 = arith.addi %2, %3 : vector<8x128xi32>
    %c1024_i32 = arith.constant 1024 : i32
    %5 = arith.muli %arg1, %c1024_i32 : i32
    %6 = vector.broadcast %5 : i32 to vector<8x128xi32>
    %7 = arith.addi %4, %6 : vector<8x128xi32>
    %8 = arith.sitofp %7 : vector<8x128xi32> to vector<8x128xf32>
    %cst = arith.constant 0.00306946039 : f32
    %9 = vector.broadcast %cst : f32 to vector<8x128xf32>
    %10 = arith.mulf %8, %9 : vector<8x128xf32>
    %c0 = arith.constant 0 : index
    %c0_0 = arith.constant 0 : index
    %c0_1 = arith.constant 0 : index
    %11 = vector.load %arg2[%c0, %c0_0, %c0_1] : memref<1x8x128xf32, #tpu.memory_space<vmem>>, vector<1x8x128xf32>
    %12 = vector.shape_cast %11 : vector<1x8x128xf32> to vector<8x128xf32>
    %13 = arith.mulf %12, %10 : vector<8x128xf32>
    %14 = math.sin %13 : vector<8x128xf32>
    %c0_2 = arith.constant 0 : index
    %c0_3 = arith.constant 0 : index
    %c0_4 = arith.constant 0 : index
    %c0_5 = arith.constant 0 : index
    %15 = vector.load %arg4[%c0_2, %c0_3, %c0_4, %c0_5] : memref<1x3x8x128xf32, #tpu.memory_space<vmem>>, vector<1x1x8x128xf32>
    %16 = vector.shape_cast %15 : vector<1x1x8x128xf32> to vector<8x128xf32>
    %c0_6 = arith.constant 0 : index
    %c0_7 = arith.constant 0 : index
    %c0_8 = arith.constant 0 : index
    %c0_9 = arith.constant 0 : index
    %17 = vector.load %arg3[%c0_6, %c0_7, %c0_8, %c0_9] : memref<1x3x8x128xf32, #tpu.memory_space<vmem>>, vector<1x1x8x128xf32>
    %18 = vector.shape_cast %17 : vector<1x1x8x128xf32> to vector<8x128xf32>
    %19 = arith.mulf %18, %10 : vector<8x128xf32>
    %20 = math.sin %19 : vector<8x128xf32>
    %21 = arith.mulf %16, %20 : vector<8x128xf32>
    %22 = arith.addf %14, %21 : vector<8x128xf32>
    %c0_10 = arith.constant 0 : index
    %c1 = arith.constant 1 : index
    %c0_11 = arith.constant 0 : index
    %c0_12 = arith.constant 0 : index
    %23 = vector.load %arg4[%c0_10, %c1, %c0_11, %c0_12] : memref<1x3x8x128xf32, #tpu.memory_space<vmem>>, vector<1x1x8x128xf32>
    %24 = vector.shape_cast %23 : vector<1x1x8x128xf32> to vector<8x128xf32>
    %c0_13 = arith.constant 0 : index
    %c1_14 = arith.constant 1 : index
    %c0_15 = arith.constant 0 : index
    %c0_16 = arith.constant 0 : index
    %25 = vector.load %arg3[%c0_13, %c1_14, %c0_15, %c0_16] : memref<1x3x8x128xf32, #tpu.memory_space<vmem>>, vector<1x1x8x128xf32>
    %26 = vector.shape_cast %25 : vector<1x1x8x128xf32> to vector<8x128xf32>
    %27 = arith.mulf %26, %10 : vector<8x128xf32>
    %28 = math.sin %27 : vector<8x128xf32>
    %29 = arith.mulf %24, %28 : vector<8x128xf32>
    %30 = arith.addf %22, %29 : vector<8x128xf32>
    %c0_17 = arith.constant 0 : index
    %c2 = arith.constant 2 : index
    %c0_18 = arith.constant 0 : index
    %c0_19 = arith.constant 0 : index
    %31 = vector.load %arg4[%c0_17, %c2, %c0_18, %c0_19] : memref<1x3x8x128xf32, #tpu.memory_space<vmem>>, vector<1x1x8x128xf32>
    %32 = vector.shape_cast %31 : vector<1x1x8x128xf32> to vector<8x128xf32>
    %c0_20 = arith.constant 0 : index
    %c2_21 = arith.constant 2 : index
    %c0_22 = arith.constant 0 : index
    %c0_23 = arith.constant 0 : index
    %33 = vector.load %arg3[%c0_20, %c2_21, %c0_22, %c0_23] : memref<1x3x8x128xf32, #tpu.memory_space<vmem>>, vector<1x1x8x128xf32>
    %34 = vector.shape_cast %33 : vector<1x1x8x128xf32> to vector<8x128xf32>
    %35 = arith.mulf %34, %10 : vector<8x128xf32>
    %36 = math.sin %35 : vector<8x128xf32>
    %37 = arith.mulf %32, %36 : vector<8x128xf32>
    %38 = arith.addf %30, %37 : vector<8x128xf32>
    %c0_24 = arith.constant 0 : index
    %c0_25 = arith.constant 0 : index
    %c0_26 = arith.constant 0 : index
    %39 = vector.load %arg5[%c0_24, %c0_25, %c0_26] : memref<1x8x128xf32, #tpu.memory_space<vmem>>, vector<1x8x128xf32>
    %40 = vector.shape_cast %39 : vector<1x8x128xf32> to vector<8x128xf32>
    %41 = vector.shape_cast %38 : vector<8x128xf32> to vector<1x8x128xf32>
    tpu.vector_store %arg5[%c0_24, %c0_25, %c0_26], %41 {strides = array<i32>} : memref<1x8x128xf32, #tpu.memory_space<vmem>>, vector<1x8x128xf32>,
    return
  }
  func.func @transform_0(%arg0: i32, %arg1: i32) -> (i32, i32, i32) {
    %c0_i32 = arith.constant 0 : i32
    %c0_i32_0 = arith.constant 0 : i32
    return %arg0, %arg1, %c0_i32 : i32, i32, i32
  }
  func.func @transform_1(%arg0: i32, %arg1: i32) -> (i32, i32, i32, i32) {
    %c0_i32 = arith.constant 0 : i32
    %c0_i32_0 = arith.constant 0 : i32
    %c0_i32_1 = arith.constant 0 : i32
    return %arg0, %c0_i32, %arg1, %c0_i32_0 : i32, i32, i32, i32
  }
  func.func @transform_2(%arg0: i32, %arg1: i32) -> (i32, i32, i32, i32) {
    %c0_i32 = arith.constant 0 : i32
    %c0_i32_0 = arith.constant 0 : i32
    %c0_i32_1 = arith.constant 0 : i32
    return %arg0, %c0_i32, %arg1, %c0_i32_0 : i32, i32, i32, i32
  }
  func.func @transform_3(%arg0: i32, %arg1: i32) -> (i32, i32, i32) {
    %c0_i32 = arith.constant 0 : i32
    %c0_i32_0 = arith.constant 0 : i32
    return %arg0, %arg1, %c0_i32 : i32, i32, i32
  }
}

</mosaic_0001>

<bundles_post_ra>
// kernel: tpu_custom_call.1
= control target key start
LH: loop header
LB: loop body
LE: loop exit
PB: predicated region body
PF: predicated region fallthrough
CT: control target
= control target key end

     0   :  { %s2149_s0 = inlined_call_operand.hbm [shape: f32[2,16,128], index: 0, kind: input, shape index: {}]   ;;  %s2150_s1 = inlined_call_operand.hbm [shape: f32[2,3,16,128], index: 1, kind: input, shape index: {}]   ;;  %s2151_s2 = inlined_call_operand.hbm [shape: f32[2,3,16,128], index: 2, kind: input, shape index: {}]   ;;  %s2152_s3 = inlined_call_operand.hbm [shape: f32[2,16,128], index: 3, kind: output, shape index: {}]  }
   0x1   :  { %2163 = sst [smem:[#allocation20_spill]] %s2150_s1 }
   0x2   :  { %2164 = sst [smem:[#allocation21_spill]] %s2151_s2 }
   0x3   :  { %8 = vsyncpa [#allocation3], 0 }
   0x4   :  { %10 = vsyncpa [#allocation3 + $0x1], 0 }
   0x5   :  { %11 = vsyncpa [#allocation6], 0 }
   0x6   :  { %13 = vsyncpa [#allocation6 + $0x1], 0 }
   0x7   :  { %14 = vsyncpa [#allocation4], 0 }
   0x8   :  { %16 = vsyncpa [#allocation4 + $0x1], 0  ;;  %s1457_s12 = smov 0   ;;  %s1459_s13 = smov 0  }
   0x9   :  { %s1461_s14 = smov 0   ;;  %s1463_s15 = smov 0  }
   0xa   :  { %s1465_s16 = smov 0   ;;  %s1467_s17 = smov 0  }
   0xb   :  { %s1469_s18 = smov 0   ;;  %s1471_s19 = smov 0  }
   0xc LB: > { %2165 = sst [smem:[#allocation12_spill]] %s1397_s12  ;;  %s1498_s20 = sadd.s32 4294967295, %s1425_s19   ;;  %s1425_s19 = sphi %s1471_s19, %s22_s19   ;;  %s1421_s18 = sphi %s1469_s18, %s2203_s18   ;;  %s1417_s17 = sphi %s1467_s17, %s2202_s17   ;;  %s1413_s16 = sphi %s1465_s16, %s2201_s16   ;;  %s1409_s15 = sphi %s1463_s15, %s2200_s15   ;;  %s1405_s14 = sphi %s1461_s14, %s2195_s14   ;;  %s1401_s13 = sphi %s1459_s13, %s2199_s13   ;;  %s1397_s12 = sphi %s1457_s12, %s2198_s12  }
   0xd   : > { %2166 = sst [smem:[#allocation13_spill]] %s1405_s14  ;;  %s1097_s21 = sadd.s32 4294967294, %s1425_s19  }
   0xe   : > { %2167 = sst [smem:[#allocation14_spill]] %s1425_s19  ;;  %s31_s22 = sadd.s32 1, %s1417_s17 }
   0xf   : > { %s34_s23 = sadd.s32 1, %s1421_s18  ;;  %p32_p0 = scmp.ge.s32.totalorder %s31_s22, 2 }
  0x10   : > { %s43_s24 = sadd.s32 1, %s1405_s14  ;;  %p50_p1 = scmp.ne.s32.totalorder %s1405_s14, %s1401_s13 }
  0x11   : > { %p51_p2 = scmp.eq.s32.totalorder %s1425_s19, 0  ;;  %s2205_s22 = smov (%p32_p0, %s31_s22), 0 }
  0x12   : > { %2168 = sst [smem:[#allocation15_spill]] %s2205_s22  ;;  %s2207_s23 = smov (!%p32_p0, %s34_s23), %s1421_s18 }
  0x13   : > { %s39_s25 = ssub.s32 %s1417_s17, %s2205_s22  ;;  %p1512_p3 = por %p51_p2, %p50_p1 }
  0x14   : > { %p36_p4 = scmp.ge.s32.totalorder %s2207_s23, 2  ;;  %p56_p5 = scmp.ne.s32.totalorder %s1401_s13, %s1397_s12 }
  0x15   : > { %p57_p6 = scmp.eq.s32.totalorder %s1498_s20, 0  ;;  %p138_p7 = scmp.eq.s32.totalorder %s1498_s20, 3 }
  0x16   : > { %s2209_s23 = smov (%p36_p4, %s2207_s23), 0  ;;  %p144_p10 = scmp.eq.s32.totalorder %s1097_s21, 3 }
  0x17   : > { %2170 = sst [smem:[#allocation16_spill]] %s2209_s23  ;;  %p1522_p8 = por %p57_p6, %p56_p5 }
  0x18   : > { %p1526_p9 = por %p138_p7, %p50_p1  ;;  %s38_s29 = ssub.s32 %s1421_s18, %s2209_s23 }
  0x19   : > { %s40_s30 = sor.u32 %s39_s25, %s38_s29  ;;  %p1532_p12 = por %p144_p10, %p56_p5 }
  0x1a   : > { %s2172_s28 = scalar_select %p1526_p9, 1, 0 }
  0x1b   : > { %p41_p11 = scmp.eq.s32.totalorder %s40_s30, 0  ;;  %p1157_p13 = scmp.lt.s32.totalorder %s1425_s19, 4 }
  0x1c   : > { %2173 = sst [smem:[#allocation17_spill]] %s2172_s28  ;;  %s1538_s5 = sand.u32 1, %s1405_s14  }
  0x1d   : > { %s2174_s4 = scalar_select %p1532_p12, 1, 0 }
  0x1e   : > { %s1541_s6 = scalar_select %p41_p11, %s1405_s14, %s43_s24  }
  0x1f   : > { %2175 = sst [smem:[#allocation18_spill]] %s2174_s4  ;;  %p1545_p0 = pnand %p1157_p13, %p1512_p3 }
  0x20   : > { %2176 = sst [smem:[#allocation19_spill]] %s1541_s6  ;;  %s185_s8 = sand.u32 1, %s1425_s19  }
  0x21   : > { %s2156_s9 = smul.u32 24, %s1538_s5  ;;  %s2178_s1 = sld [smem:[#allocation20_spill]] }
  0x22   : > { %s1131_s10 = smul.u32 6, %s1421_s18  ;;  %s2179_s2 = sld [smem:[#allocation21_spill]] }
  0x23   : > { %s189_s21 = scalar_lea.vmem [#allocation5], %s2156_s9  ;;  %s1427_s9 = smov 256  }
  0x24   : > { %s193_s11 = sadd.s32 %s1417_s17, %s1131_s10  ;;  %s198_s25 = sshll.u32 %s189_s21, 4  ;;  %s199_s25 = int_to_ptr.vmem [resolvable:$true] %s198_s25 }
  0x25   : > { %s1103_s29 = sshll.u32 %s193_s11, 3  ;;  %s1561_s10 = scalar_lea.sflag [#allocation6], %s185_s8 }
  0x26   : > { %s1428_s21 = smov 128   ;;  %s1429_s11 = smov 8  }
  0x27   : > { %s195_s26 = scalar_lea.hbm %s2178_s1, %s1103_s29  ;;  %p1105_p1 = scmp.ge.s32.totalorder %s1425_s19, 1 }
  0x28   : > { %s196_s23 = sshll.u32 %s195_s26, 4  ;;  %s218_s14 = scalar_lea.hbm %s2179_s2, %s1103_s29  ;;  %s197_s23 = int_to_ptr.hbm [resolvable:$true] %s196_s23 }
  0x29   : > { %1149 = dma.hbm_to_vmem [thread:$0]  (!%p1545_p0), %s197_s23, 384, %s199_s25, %s1561_s10, %s1427_s9, %s1428_s21, %s1429_s11  }
  0x2a   : > { %s219_s4 = sshll.u32 %s218_s14, 4  ;;  %p229_p2 = scmp.lt.s32.totalorder %s1425_s19, 5  ;;  %s220_s4 = int_to_ptr.hbm [resolvable:$true] %s219_s4 }
  0x2b   : > { %s1100_s22 = sshll.u32 %s1538_s5, 3  ;;  %s1101_s6 = sshll.u32 %s1421_s18, 1 }
  0x2c   : > { %p1568_p3 = pnand %p1105_p1, %p229_p2  ;;  %s172_s8 = sadd.s32 %s1417_s17, %s1101_s6 }
  0x2d   : > { %s1102_s29 = sshll.u32 %s172_s8, 3  ;;  %s168_s30 = scalar_lea.vmem [#allocation2], %s1100_s22 }
  0x2e   : > { %s178_s26 = sshll.u32 %s168_s30, 4  ;;  %s174_s14 = scalar_lea.hbm %s2149_s0, %s1102_s29  ;;  %s179_s26 = int_to_ptr.vmem [resolvable:$true] %s178_s26 }
  0x2f   : > { %s176_s1 = sshll.u32 %s174_s14, 4  ;;  %s2181_s2 = smul.u32 24, %s1538_s5  ;;  %s177_s1 = int_to_ptr.hbm [resolvable:$true] %s176_s1 }
  0x30   : > { %s165_s28 = scalar_lea.sflag [#allocation3], %s1538_s5  ;;  %233 = sbr.rel (%p1568_p3) target bundleno = 256 (0x100), region = 32 }
  0x31   : > { %s212_s12 = scalar_lea.vmem [#allocation7], %s2181_s2  ;;  %s1589_s22 = sand.u32 (!%p1568_p3), 1, %s1401_s13  }
  0x32   : > { %s221_s19 = sshll.u32 %s212_s12, 4  ;;  %s1106_s6 = sshll.u32 (!%p1568_p3), %s1589_s22, 3  ;;  %s222_s19 = int_to_ptr.vmem [resolvable:$true] %s221_s19 }
  0x33   : > { %1146 = dma.hbm_to_vmem [thread:$0]  (!%p1545_p0), %s177_s1, 128, %s179_s26, %s165_s28  }
  0x34   : > { %1152 = dma.hbm_to_vmem [thread:$0]  (!%p1545_p0), %s220_s4, 384, %s222_s19, %s1561_s10, %s1427_s9, %s1428_s21, %s1429_s11  }
  0x35   : > { %s236_s8 = scalar_lea.sflag [#allocation3], %s1589_s22  ;;  %s239_s2 = scalar_lea.vmem [#allocation2], %s1106_s6 }
  0x36   : > { %1384 = dma.done.wait (%p1522_p8), %s236_s8, 128  }
  0x37   : > { %1386 = vsyncadd (%p1522_p8), %s236_s8, 4294967168  ;;  %s245_s1 = sand.u32 1, %s1498_s20   ;;  %s1134_s12 = smul.u32 24, %s1589_s22 }
  0x38   : > { %s246_s19 = scalar_lea.sflag [#allocation6], %s245_s1 }
  0x39   : > { %s1603_s28 = scalar_lea.vmem [#allocation5], %s1134_s12 }
  0x3a   : > { %1388 = dma.done.wait (%p1522_p8), %s246_s19, 768  }
  0x3b   : > { %1390 = vsyncadd (%p1522_p8), %s246_s19, 4294966528  ;;  %v293_v0 = vlaneseq  ;;  %s1108_s4 = sshll.u32 %s1409_s15, 10  ;;  %v304_v8 = vld [vmem:[%s239_s2] sm:$0xff]  ;;  %v1116_v17 = vld [vmem:[%s1603_s28 + $0x8] sm:$0xff]  ;;  %v1430_v33 = vmov 683565275  }
  0x3c   : > { %v300_v4 = vstv %s1108_s4  ;;  %v462_v9 = vld [vmem:[%s1603_s28] sm:$0xff]  ;;  %v1431_v35 = vmov 2475754826   ;;  %v1432_v37 = vmov 2131351028   ;;  %s2094_s20 = scalar_lea.vmem [#allocation7], %s1134_s12 }
  0x3d   : > { %v294_v1 = vshrl.u32 %v293_v0, 7  ;;  %v297_v2 = vand.u32 127, %v293_v0  ;;  %v1433_v39 = vmov 2102212464   ;;  %v1434_v41 = vmov 920167782  }
  0x3e   : > { %v1435_v50 = vmov 1326507024   ;;  %s1126_s27 = sshll.u32 %s1413_s16, 1  ;;  %s292_s21 = scalar_lea.vmem [#allocation8], %s1106_s6 }
  0x3f   : > { %v295_v3 = vmul.u32 128, %v294_v1  ;;  %s957_s5 = sadd.s32 %s1409_s15, %s1126_s27  ;;  %s961_s11 = sshll.u32 %s292_s21, 4  ;;  %s962_s11 = int_to_ptr.vmem [resolvable:$true] %s961_s11 }
  0x40   : > { %s1127_s16 = sshll.u32 %s957_s5, 3  ;;  %s947_s29 = scalar_lea.sflag [#allocation4], %s1589_s22 }
  0x41   : > { %v298_v5 = vadd.s32 %v297_v2, %v295_v3  ;;  %s959_s9 = scalar_lea.hbm %s2152_s3, %s1127_s16  ;;  %s1343_s14 = scalar_lea.hbm %s2152_s3, 32 }
  0x42   : > { %s963_s24 = sshll.u32 %s959_s9, 4  ;;  %s964_s24 = int_to_ptr.hbm [resolvable:$true] %s963_s24 }
  0x43   : > { %v301_v6 = vadd.s32 %v300_v4, %v298_v5  ;;  %s1337_s30 = sshra.s32 %s964_s24, 4  ;;  %s1338_s30 = int_to_ptr.hbm [resolvable:$true] %s1337_s30 }
  0x44   : > { %s1339_s26 = scalar_lea.hbm %s1338_s30, 8  ;;  %p1344_p7 = scmp.lt.s32.totalorder %s1338_s30, %s2152_s3 }
  0x45   : > { %v302_v7 = vcvt.s32.f32 %v301_v6  ;;  %p1340_p4 = scmp.ne.s32.totalorder %s1338_s30, %s1339_s26  ;;  %p1345_p8 = scmp.lt.s32.totalorder %s1343_s14, %s1339_s26 }
  0x47   : > { %v1611_v10 = vmul.f32 0.0030694604, %v302_v7  ;;  %p1341_p5 = pnand %p1340_p4, %p1526_p9  ;;  %p1346_p10 = por %p1345_p8, %p1344_p7 }
  0x49   : > { %v1614_v11 = vmul.f32 %v304_v8, %v1611_v10  ;;  %v1617_v12 = vmul.f32 %v462_v9, %v1611_v10  ;;  %v1625_v22 = vmul.f32 %v1116_v17, %v1611_v10  ;;  %p1342_p6 = pneg %p1341_p5 }
  0x4b   : > { %v309_v13 = vand.u32 2139095040, %v1614_v11  ;;  %v467_v14 = vand.u32 2139095040, %v1617_v12  ;;  %v306_v15 = vand.u32 2147483647, %v1614_v11  ;;  %v464_v20 = vand.u32 2147483647, %v1617_v12  ;;  %p1347_p11 = pnand %p1346_p10, %p1342_p6 }
  0x4c   : > { %v629_v28 = vand.u32 2139095040, %v1625_v22 }
  0x4d   : > { %v310_v16 = vshrl.u32 %v309_v13, 23  ;;  %v468_v18 = vshrl.u32 %v467_v14, 23  ;;  %v313_v23 = vand.u32 8388607, %v306_v15  ;;  %v471_v27 = vand.u32 8388607, %v464_v20 }
  0x4e   : > { %v630_v44 = vshrl.u32 %v629_v28, 23 }
  0x4f   : > { %v1109_v19 = vadd.s32 4294967169, %v310_v16  ;;  %v1112_v21 = vadd.s32 4294967169, %v468_v18  ;;  %v314_v29 = vor.u32 8388608, %v313_v23  ;;  %v472_v43 = vor.u32 8388608, %v471_v27 }
  0x50   : > { %v1117_v58 = vadd.s32 4294967169, %v630_v44 }
  0x51   : > { %v316_v24 = vadd.s32 1, %v1109_v19  ;;  %v474_v25 = vadd.s32 1, %v1112_v21  ;;  %v1647_v48 = vshll.u32 %v314_v29, 8  ;;  %v1682_v3 = vshll.u32 %v472_v43, 8 }
  0x52   : > { %v636_v7 = vadd.s32 1, %v1117_v58 }
  0x53   : > { %vm317_vm0 = vcmp.gt.s32.totalorder %v316_v24, 0  ;;  %vm475_vm1 = vcmp.gt.s32.totalorder %v474_v25, 0  ;;  %v355_v2 = vand.u32 65535, %v1647_v48  ;;  %v356_v6 = vshrl.u32 %v1647_v48, 16 }
  0x54   : > { %v318_v26 = vsel %vm317_vm0, %v316_v24, 0  ;;  %v476_v52 = vsel %vm475_vm1, %v474_v25, 0  ;;  %v1694_v18 = vand.u32 65535, %v1682_v3  ;;  %v1697_v19 = vshrl.u32 %v1682_v3, 16 }
  0x55   : > { %v320_v30 = vand.u32 31, %v318_v26  ;;  %v1632_v31 = vshrl.u32 %v318_v26, 5  ;;  %v478_v63 = vand.u32 31, %v476_v52  ;;  %v1703_v25 = vshrl.u32 %v476_v52, 5 }
  0x56   : > { %vm637_vm6 = vcmp.gt.s32.totalorder %v636_v7, 0 }
  0x57   : > { %v1634_v32 = vsub.s32 32, %v320_v30  ;;  %v323_v34 = vshll.u32 %v1430_v33, %v320_v30  ;;  %v326_v36 = vshll.u32 %v1431_v35, %v320_v30  ;;  %v329_v38 = vshll.u32 %v1432_v37, %v320_v30 }
  0x58   : > { %v332_v40 = vshll.u32 %v1433_v39, %v320_v30  ;;  %v335_v42 = vshll.u32 %v1434_v41, %v320_v30  ;;  %vm338_vm2 = vcmp.lt.s32.totalorder %v1632_v31, 1  ;;  %vm341_vm3 = vcmp.lt.s32.totalorder %v1632_v31, 4 }
  0x59   : > { %v324_v45 = vshrl.u32 %v1431_v35, %v1634_v32  ;;  %v327_v46 = vshrl.u32 %v1432_v37, %v1634_v32  ;;  %v330_v47 = vshrl.u32 %v1433_v39, %v1634_v32  ;;  %v333_v49 = vshrl.u32 %v1434_v41, %v1634_v32 }
  0x5a   : > { %v336_v51 = vshrl.u32 %v1435_v50, %v1634_v32  ;;  %vm340_vm4 = vcmp.lt.s32.totalorder %v1632_v31, 3  ;;  %vm339_vm5 = vcmp.lt.s32.totalorder %v1632_v31, 2  ;;  %v1689_v16 = vsub.s32 32, %v478_v63 }
  0x5b   : > { %v1655_v53 = vor.u32 %v324_v45, %v323_v34  ;;  %v1657_v54 = vor.u32 %v327_v46, %v326_v36  ;;  %v1659_v55 = vor.u32 %v330_v47, %v329_v38  ;;  %v334_v56 = vor.u32 %v333_v49, %v332_v40 }
  0x5c   : > { %v337_v57 = vor.u32 %v336_v51, %v335_v42  ;;  %v481_v29 = vshll.u32 %v1430_v33, %v478_v63  ;;  %v482_v34 = vshrl.u32 %v1431_v35, %v1689_v16  ;;  %v484_v36 = vshll.u32 %v1431_v35, %v478_v63 }
  0x5d   : > { %v346_v59 = vsel %vm338_vm2, %v1655_v53, %v1657_v54  ;;  %v350_v60 = vsel %vm338_vm2, %v1657_v54, %v1659_v55  ;;  %v347_v61 = vsel %vm341_vm3, %v334_v56, 920167782  ;;  %v485_v38 = vshrl.u32 %v1432_v37, %v1689_v16 }
  0x5e   : > { %v351_v62 = vsel %vm341_vm3, %v337_v57, 1326507024  ;;  %v348_v0 = vsel %vm340_vm4, %v1659_v55, %v347_v61  ;;  %v322_v40 = vshrl.u32 %v1430_v33, %v1634_v32  ;;  %v487_v42 = vshll.u32 %v1432_v37, %v478_v63 }
  0x5f   : > { %v352_v1 = vsel %vm340_vm4, %v334_v56, %v351_v62  ;;  %v349_v4 = vsel %vm339_vm5, %v346_v59, %v348_v0  ;;  %v488_v43 = vshrl.u32 %v1433_v39, %v1689_v16  ;;  %v490_v44 = vshll.u32 %v1433_v39, %v478_v63 }
  0x60   : > { %v353_v5 = vsel %vm339_vm5, %v350_v60, %v352_v1  ;;  %v379_v13 = vand.u32 65535, %v349_v4  ;;  %v380_v14 = vshrl.u32 %v349_v4, 16  ;;  %v491_v47 = vshrl.u32 %v1434_v41, %v1689_v16 }
  0x61   : > { %v357_v8 = vand.u32 65535, %v353_v5  ;;  %v358_v9 = vshrl.u32 %v353_v5, 16  ;;  %v493_v32 = vshll.u32 %v1434_v41, %v478_v63  ;;  %v483_v57 = vor.u32 %v482_v34, %v481_v29 }
  0x62   : > { %v381_v21 = vmul.u32 %v379_v13, %v355_v2  ;;  %v1699_v23 = vmul.u32 %v380_v14, %v355_v2  ;;  %v1701_v24 = vmul.u32 %v379_v13, %v356_v6  ;;  %v384_v56 = vmul.u32 %v380_v14, %v356_v6 }
  0x63   : > { %v1691_v17 = vmul.u32 %v358_v9, %v355_v2  ;;  %v359_v26 = vmul.u32 %v357_v8, %v355_v2  ;;  %v1705_v27 = vmul.u32 %v357_v8, %v356_v6  ;;  %v362_v52 = vmul.u32 %v358_v9, %v356_v6 }
  0x64   : > { %v385_v30 = vshll.u32 %v1699_v23, 16  ;;  %v387_v45 = vshll.u32 %v1701_v24, 16  ;;  %v1728_v58 = vor.u32 %v485_v38, %v484_v36  ;;  %v1436_v59 = vmov 0  }
  0x65   : > { %v363_v28 = vshll.u32 %v1691_v17, 16  ;;  %v365_v49 = vshll.u32 %v1705_v27, 16  ;;  %v489_v61 = vor.u32 %v488_v43, %v487_v42  ;;  %v492_v62 = vor.u32 %v491_v47, %v490_v44 }
  0x66   : > { %vm389_vm7 = vc.u32 %v381_v21, %v385_v30  ;;  %v1722_v46 = vadd.s32 %v385_v30, %v381_v21  ;;  %v494_v0 = vshrl.u32 %v1435_v50, %v1689_v16  ;;  %vm496_vm10 = vcmp.lt.s32.totalorder %v1703_v25, 1 }
  0x67   : > { %vm367_vm8 = vc.u32 %v359_v26, %v363_v28  ;;  %v369_v51 = vadd.s32 %v363_v28, %v359_v26  ;;  %v390_v60 = vsel %vm389_vm7, 1, %v1436_v59  ;;  %vm498_vm11 = vcmp.lt.s32.totalorder %v1703_v25, 3 }
  0x68   : > { %v368_v1 = vsel %vm367_vm8, 1, %v1436_v59  ;;  %vm393_vm9 = vc.u32 %v1722_v46, %v387_v45  ;;  %v495_v63 = vor.u32 %v494_v0, %v493_v32  ;;  %vm497_vm13 = vcmp.lt.s32.totalorder %v1703_v25, 2 }
  0x69   : > { %vm371_vm12 = vc.u32 %v369_v51, %v365_v49  ;;  %vm499_vm14 = vcmp.lt.s32.totalorder %v1703_v25, 4  ;;  %v343_v2 = vsel %vm341_vm3, %v1659_v55, 2102212464  ;;  %v392_v4 = vadd.s32 %v390_v60, %v384_v56 }
  0x6a   : > { %v504_v5 = vsel %vm496_vm10, %v483_v57, %v1728_v58  ;;  %v505_v6 = vsel %vm499_vm14, %v492_v62, 920167782  ;;  %v370_v8 = vadd.s32 %v368_v1, %v362_v52  ;;  %v394_v9 = vsel %vm393_vm9, 1, %v1436_v59 }
  0x6b   : > { %v506_v13 = vsel %vm498_vm11, %v489_v61, %v505_v6  ;;  %v508_v14 = vsel %vm496_vm10, %v1728_v58, %v489_v61  ;;  %v372_v55 = vsel %vm371_vm12, 1, %v1436_v59  ;;  %v509_v26 = vsel %vm499_vm14, %v495_v63, 1326507024 }
  0x6c   : > { %v507_v21 = vsel %vm497_vm13, %v504_v5, %v506_v13  ;;  %v1761_v28 = vsel %vm637_vm6, %v636_v7, 0  ;;  %v342_v29 = vsel %vm338_vm2, %v322_v40, %v1655_v53  ;;  %v344_v30 = vsel %vm340_vm4, %v1657_v54, %v343_v2 }
  0x6d   : > { %v510_v34 = vsel %vm498_vm11, %v492_v62, %v509_v26  ;;  %v537_v36 = vand.u32 65535, %v507_v21  ;;  %v386_v38 = vshrl.u32 %v1699_v23, 16  ;;  %v396_v42 = vadd.s32 %v394_v9, %v392_v4 }
  0x6e   : > { %v511_v43 = vsel %vm497_vm13, %v508_v14, %v510_v34  ;;  %v538_v7 = vshrl.u32 %v507_v21, 16  ;;  %v364_v44 = vshrl.u32 %v1691_v17, 16  ;;  %v374_v47 = vadd.s32 %v372_v55, %v370_v8 }
  0x6f   : > { %v515_v49 = vand.u32 65535, %v511_v43  ;;  %v516_v53 = vshrl.u32 %v511_v43, 16  ;;  %v480_v40 = vshrl.u32 %v1430_v33, %v1689_v16  ;;  %v539_v54 = vmul.u32 %v537_v36, %v1694_v18 }
  0x70   : > { %v540_v51 = vmul.u32 %v538_v7, %v1694_v18  ;;  %v541_v32 = vmul.u32 %v537_v36, %v1697_v19  ;;  %v366_v23 = vshrl.u32 %v1705_v27, 16  ;;  %v388_v60 = vshrl.u32 %v1701_v24, 16 }
  0x71   : > { %v517_v52 = vmul.u32 %v515_v49, %v1694_v18  ;;  %v518_v56 = vmul.u32 %v516_v53, %v1694_v18  ;;  %v519_v17 = vmul.u32 %v515_v49, %v1697_v19  ;;  %v397_v62 = vadd.s32 %v396_v42, %v386_v38 }
  0x72   : > { %v542_v0 = vmul.u32 %v538_v7, %v1697_v19  ;;  %v543_v16 = vshll.u32 %v540_v51, 16  ;;  %v375_v1 = vadd.s32 %v374_v47, %v364_v44  ;;  %v520_v63 = vmul.u32 %v516_v53, %v1697_v19 }
  0x73   : > { %v521_v2 = vshll.u32 %v518_v56, 16  ;;  %v523_v4 = vshll.u32 %v519_v17, 16  ;;  %v1790_v27 = vadd.s32 %v1722_v46, %v387_v45  ;;  %v500_v18 = vsel %vm496_vm10, %v480_v40, %v483_v57 }
  0x74   : > { %v545_v5 = vshll.u32 %v541_v32, 16  ;;  %vm547_vm15 = vc.u32 %v539_v54, %v543_v16  ;;  %v501_v6 = vsel %vm499_vm14, %v489_v61, 2102212464  ;;  %v398_v19 = vadd.s32 %v397_v62, %v388_v60 }
  0x75   : > { %vm525_vm0 = vc.u32 %v517_v52, %v521_v2  ;;  %v527_v8 = vadd.s32 %v521_v2, %v517_v52  ;;  %v548_v9 = vsel %vm547_vm15, 1, %v1436_v59  ;;  %v549_v14 = vadd.s32 %v543_v16, %v539_v54 }
  0x76   : > { %v526_v13 = vsel %vm525_vm0, 1, %v1436_v59  ;;  %v550_v24 = vadd.s32 %v548_v9, %v542_v0  ;;  %v1798_v55 = vadd.s32 %v375_v1, %v366_v23  ;;  %v522_v45 = vshrl.u32 %v518_v56, 16 }
  0x77   : > { %v528_v46 = vadd.s32 %v526_v13, %v520_v63  ;;  %vm529_vm1 = vc.u32 %v527_v8, %v523_v4  ;;  %v502_v57 = vsel %vm498_vm11, %v1728_v58, %v501_v6  ;;  %v544_v21 = vshrl.u32 %v540_v51, 16 }
  0x78   : > { %v530_v61 = vsel %vm529_vm1, 1, %v1436_v59  ;;  %vm551_vm2 = vc.u32 %v549_v14, %v545_v5  ;;  %v524_v26 = vshrl.u32 %v519_v17, 16  ;;  %v640_v38 = vand.u32 31, %v1761_v28 }
  0x79   : > { %v532_v34 = vadd.s32 %v530_v61, %v528_v46  ;;  %v552_v36 = vsel %vm551_vm2, 1, %v1436_v59  ;;  %v345_v42 = vsel %vm339_vm5, %v342_v29, %v344_v30  ;;  %v402_v43 = vadd.s32 1, %v398_v19 }
  0x7a   : > { %v546_v7 = vshrl.u32 %v541_v32, 16  ;;  %v554_v44 = vadd.s32 %v552_v36, %v550_v24  ;;  %vm401_vm3 = vc.u32 %v1798_v55, %v1790_v27  ;;  %v1810_v47 = vadd.s32 %v549_v14, %v545_v5 }
  0x7b   : > { %v533_v58 = vadd.s32 %v532_v34, %v522_v45  ;;  %v503_v49 = vsel %vm497_vm13, %v500_v18, %v502_v57  ;;  %v399_v40 = vmul.u32 %v1647_v48, %v345_v42  ;;  %v1817_v51 = vsub.s32 32, %v640_v38 }
  0x7c   : > { %v555_v53 = vadd.s32 %v554_v44, %v544_v21  ;;  %v403_v31 = vsel %vm401_vm3, %v402_v43, %v398_v19  ;;  %v557_v30 = vmul.u32 %v1682_v3, %v503_v49  ;;  %v626_v23 = vand.u32 2147483647, %v1625_v22 }
  0x7d   : > { %v1815_v54 = vadd.s32 %v533_v58, %v524_v26  ;;  %v404_v52 = vadd.s32 %v403_v31, %v399_v40  ;;  %v646_v25 = vshll.u32 %v1431_v35, %v640_v38  ;;  %v647_v48 = vshrl.u32 %v1432_v37, %v1817_v51 }
  0x7e   : > { %v556_v29 = vadd.s32 %v555_v53, %v546_v7  ;;  %v649_v56 = vshll.u32 %v1432_v37, %v640_v38  ;;  %v650_v60 = vshrl.u32 %v1433_v39, %v1817_v51  ;;  %v652_v3 = vshll.u32 %v1433_v39, %v640_v38 }
  0x7f   : > { %vm559_vm4 = vc.u32 %v1815_v54, %v1810_v47  ;;  %v653_v62 = vshrl.u32 %v1434_v41, %v1817_v51  ;;  %v1833_v16 = vshrl.u32 %v1761_v28, 5  ;;  %v655_v1 = vshll.u32 %v1434_v41, %v640_v38 }
  0x80   : > { %v560_v32 = vadd.s32 1, %v556_v29  ;;  %v656_v63 = vshrl.u32 %v1435_v50, %v1817_v51  ;;  %v633_v2 = vand.u32 8388607, %v626_v23  ;;  %v405_v4 = vadd.s32 536870912, %v404_v52 }
  0x81   : > { %v643_v18 = vshll.u32 %v1430_v33, %v640_v38  ;;  %v644_v5 = vshrl.u32 %v1431_v35, %v1817_v51  ;;  %v1843_v8 = vor.u32 %v647_v48, %v646_v25  ;;  %v651_v9 = vor.u32 %v650_v60, %v649_v56 }
  0x82   : > { %v561_v17 = vsel %vm559_vm4, %v560_v32, %v556_v29  ;;  %v654_v28 = vor.u32 %v653_v62, %v652_v3  ;;  %v657_v19 = vor.u32 %v656_v63, %v655_v1  ;;  %vm658_vm5 = vcmp.lt.s32.totalorder %v1833_v16, 1 }
  0x83   : > { %v562_v0 = vadd.s32 %v561_v17, %v557_v30  ;;  %vm661_vm6 = vcmp.lt.s32.totalorder %v1833_v16, 4  ;;  %v634_v13 = vor.u32 8388608, %v633_v2  ;;  %v1847_v14 = vshrl.u32 %v405_v4, 30 }
  0x84   : > { %v645_v24 = vor.u32 %v644_v5, %v643_v18  ;;  %vm660_vm7 = vcmp.lt.s32.totalorder %v1833_v16, 3  ;;  %vm659_vm8 = vcmp.lt.s32.totalorder %v1833_v16, 2  ;;  %v667_v46 = vsel %vm661_vm6, %v654_v28, 920167782 }
  0x85   : > { %v563_v6 = vadd.s32 536870912, %v562_v0  ;;  %v670_v57 = vsel %vm658_vm5, %v1843_v8, %v651_v9  ;;  %v671_v61 = vsel %vm661_vm6, %v657_v19, 1326507024  ;;  %v1862_v26 = vshll.u32 %v634_v13, 8 }
  0x86   : > { %v672_v21 = vsel %vm660_vm7, %v654_v28, %v671_v61  ;;  %v407_v34 = vshll.u32 %v1847_v14, 30  ;;  %v666_v36 = vsel %vm658_vm5, %v645_v24, %v1843_v8  ;;  %v668_v38 = vsel %vm660_vm7, %v651_v9, %v667_v46 }
  0x87   : > { %v1850_v45 = vshrl.u32 %v563_v6, 30  ;;  %v673_v42 = vsel %vm659_vm8, %v670_v57, %v672_v21  ;;  %v675_v7 = vand.u32 65535, %v1862_v26  ;;  %v676_v44 = vshrl.u32 %v1862_v26, 16  ;;  %v1121_v21 = vld [vmem:[%s1603_s28 + $0x10] sm:$0xff] }
  0x88   : > { %v677_v58 = vand.u32 65535, %v673_v42  ;;  %v678_v49 = vshrl.u32 %v673_v42, 16  ;;  %v669_v53 = vsel %vm659_vm8, %v666_v36, %v668_v38  ;;  %v1877_v30 = vsub.s32 %v404_v52, %v407_v34 }
  0x89   : > { %v565_v43 = vshll.u32 %v1850_v45, 30  ;;  %v700_v56 = vshrl.u32 %v669_v53, 16  ;;  %v699_v60 = vand.u32 65535, %v669_v53  ;;  %v642_v57 = vshrl.u32 %v1430_v33, %v1817_v51 }
  0x8a   : > { %v681_v40 = vmul.u32 %v677_v58, %v676_v44  ;;  %v679_v31 = vmul.u32 %v677_v58, %v675_v7  ;;  %v680_v29 = vmul.u32 %v678_v49, %v675_v7  ;;  %v682_v17 = vmul.u32 %v678_v49, %v676_v44 }
  0x8b   : > { %v1879_v32 = vsub.s32 %v562_v0, %v565_v43  ;;  %vm409_vm10 = vcmp.lt.s32.totalorder %v1877_v30, 0  ;;  %v410_v62 = vsub.s32 0, %v1877_v30  ;;  %v702_v0 = vmul.u32 %v700_v56, %v675_v7 }
  0x8c   : > { %v683_v25 = vshll.u32 %v680_v29, 16  ;;  %v685_v48 = vshll.u32 %v681_v40, 16  ;;  %v703_v2 = vmul.u32 %v699_v60, %v676_v44  ;;  %v701_v4 = vmul.u32 %v699_v60, %v675_v7 }
  0x8d   : > { %v568_v1 = vsub.s32 0, %v1879_v32  ;;  %vm567_vm11 = vcmp.lt.s32.totalorder %v1879_v32, 0  ;;  %v411_v18 = vsel %vm409_vm10, %v410_v62, %v1877_v30  ;;  %v684_v28 = vshrl.u32 %v680_v29, 16 }
  0x8e   : > { %vm687_vm9 = vc.u32 %v679_v31, %v683_v25  ;;  %v689_v3 = vadd.s32 %v683_v25, %v679_v31  ;;  %v704_v13 = vmul.u32 %v700_v56, %v676_v44  ;;  %v705_v46 = vshll.u32 %v702_v0, 16 }
  0x8f   : > { %v688_v52 = vsel %vm687_vm9, 1, %v1436_v59  ;;  %v569_v5 = vsel %vm567_vm11, %v568_v1, %v1879_v32  ;;  %v707_v61 = vshll.u32 %v703_v2, 16  ;;  %v412_v36 = vclz %v411_v18 }
  0x90   : > { %vm691_vm12 = vc.u32 %v689_v3, %v685_v48  ;;  %v690_v63 = vadd.s32 %v688_v52, %v682_v17  ;;  %v570_v34 = vclz %v569_v5  ;;  %vm709_vm13 = vc.u32 %v701_v4, %v705_v46 }
  0x91   : > { %v692_v6 = vsel %vm691_vm12, 1, %v1436_v59  ;;  %v663_v38 = vsel %vm661_vm6, %v651_v9, 2102212464  ;;  %v710_v42 = vsel %vm709_vm13, 1, %v1436_v59  ;;  %v711_v43 = vadd.s32 %v705_v46, %v701_v4 }
  0x92   : > { %v694_v19 = vadd.s32 %v692_v6, %v690_v63  ;;  %v686_v7 = vshrl.u32 %v681_v40, 16  ;;  %v712_v49 = vadd.s32 %v710_v42, %v704_v13  ;;  %v1896_v44 = vmul.f32 %v1121_v21, %v1611_v10 }
  0x93   : > { %v662_v51 = vsel %vm658_vm5, %v642_v57, %v645_v24  ;;  %v706_v53 = vshrl.u32 %v702_v0, 16  ;;  %vm713_vm14 = vc.u32 %v711_v43, %v707_v61  ;;  %v1113_v31 = vadd.s32 4294967294, %v570_v34 }
  0x94   : > { %v695_v58 = vadd.s32 %v694_v19, %v684_v28  ;;  %v664_v29 = vsel %vm660_vm7, %v1843_v8, %v663_v38  ;;  %v714_v9 = vsel %vm713_vm14, 1, %v1436_v59  ;;  %v791_v25 = vand.u32 2139095040, %v1896_v44 }
  0x95   : > { %v1110_v40 = vadd.s32 4294967294, %v412_v36  ;;  %v708_v48 = vshrl.u32 %v703_v2, 16  ;;  %v716_v56 = vadd.s32 %v714_v9, %v712_v49  ;;  %v1907_v10 = vadd.s32 %v711_v43, %v707_v61 }
  0x96   : > { %v1905_v17 = vadd.s32 %v695_v58, %v686_v7  ;;  %v792_v60 = vshrl.u32 %v791_v25, 23  ;;  %v665_v24 = vsel %vm659_vm8, %v662_v51, %v664_v29  ;;  %vm1114_vm15 = vcmp.lt.s32.totalorder %v1113_v31, 0 }
  0x97   : > { %v717_v3 = vadd.s32 %v716_v56, %v706_v53  ;;  %vm1111_vm0 = vcmp.lt.s32.totalorder %v1110_v40, 0  ;;  %v719_v1 = vmul.u32 %v1862_v26, %v665_v24  ;;  %v573_v0 = vsel %vm1114_vm15, 0, %v1113_v31 }
  0x98   : > { %v1122_v62 = vadd.s32 4294967169, %v792_v60  ;;  %vm721_vm1 = vc.u32 %v1905_v17, %v1907_v10  ;;  %v415_v2 = vsel %vm1111_vm0, 0, %v1110_v40  ;;  %v400_v4 = vadd.s32 %v1790_v27, %v1798_v55 }
  0x99   : > { %v718_v8 = vadd.s32 %v717_v3, %v708_v48  ;;  %v416_v16 = vsub.s32 32, %v415_v2  ;;  %v578_v6 = vsub.s32 4294967266, %v573_v0  ;;  %v788_v19 = vand.u32 2147483647, %v1896_v44 }
  0x9a   : > { %v798_v52 = vadd.s32 1, %v1122_v62  ;;  %v417_v26 = vshll.u32 %v1877_v30, %v415_v2  ;;  %v558_v46 = vadd.s32 %v1810_v47, %v1815_v54  ;;  %v420_v21 = vsub.s32 4294967266, %v415_v2 }
  0x9b   : > { %v722_v63 = vadd.s32 1, %v718_v8  ;;  %v418_v61 = vshrl.u32 %v400_v4, %v416_v16  ;;  %v574_v34 = vsub.s32 32, %v573_v0  ;;  %v579_v27 = vadd.s32 127, %v578_v6 }
  0x9c   : > { %vm799_vm2 = vcmp.gt.s32.totalorder %v798_v52, 0  ;;  %v795_v38 = vand.u32 8388607, %v788_v19  ;;  %v421_v53 = vadd.s32 127, %v420_v21  ;;  %v575_v31 = vshll.u32 %v1879_v32, %v573_v0 }
  0x9d   : > { %v723_v18 = vsel %vm721_vm1, %v722_v63, %v718_v8  ;;  %v800_v5 = vsel %vm799_vm2, %v798_v52, 0  ;;  %v576_v29 = vshrl.u32 %v558_v46, %v574_v34  ;;  %v580_v9 = vshll.u32 %v579_v27, 23 }
  0x9e   : > { %v724_v28 = vadd.s32 %v723_v18, %v719_v1  ;;  %v802_v13 = vand.u32 31, %v800_v5  ;;  %v1934_v58 = vshrl.u32 %v800_v5, 5  ;;  %v796_v40 = vor.u32 8388608, %v795_v38 }
  0x9f   : > { %v422_v3 = vshll.u32 %v421_v53, 23  ;;  %v577_v62 = vor.u32 %v576_v29, %v575_v31  ;;  %v581_v8 = vor.u32 4788187, %v580_v9  ;;  %v419_v2 = vor.u32 %v418_v61, %v417_v26 }
  0xa0   : > { %v725_v57 = vadd.s32 536870912, %v724_v28  ;;  %v1920_v36 = vsub.s32 32, %v802_v13  ;;  %v805_v42 = vshll.u32 %v1430_v33, %v802_v13  ;;  %v808_v43 = vshll.u32 %v1431_v35, %v802_v13 }
  0xa1   : > { %v814_v54 = vshll.u32 %v1433_v39, %v802_v13  ;;  %v811_v49 = vshll.u32 %v1432_v37, %v802_v13  ;;  %vm820_vm4 = vcmp.lt.s32.totalorder %v1934_v58, 1  ;;  %vm822_vm5 = vcmp.lt.s32.totalorder %v1934_v58, 3 }
  0xa2   : > { %v1922_v55 = vshrl.u32 %v725_v57, 30  ;;  %v806_v30 = vshrl.u32 %v1431_v35, %v1920_v36  ;;  %v809_v47 = vshrl.u32 %v1432_v37, %v1920_v36  ;;  %v812_v51 = vshrl.u32 %v1433_v39, %v1920_v36 }
  0xa3   : > { %v815_v35 = vshrl.u32 %v1434_v41, %v1920_v36  ;;  %v817_v37 = vshll.u32 %v1434_v41, %v802_v13  ;;  %v818_v39 = vshrl.u32 %v1435_v50, %v1920_v36  ;;  %vm823_vm6 = vcmp.lt.s32.totalorder %v1934_v58, 4 }
  0xa4   : > { %v727_v7 = vshll.u32 %v1922_v55, 30  ;;  %v1942_v48 = vor.u32 %v806_v30, %v805_v42  ;;  %v1944_v56 = vor.u32 %v809_v47, %v808_v43  ;;  %v813_v32 = vor.u32 %v812_v51, %v811_v49 }
  0xa5   : > { %v816_v60 = vor.u32 %v815_v35, %v814_v54  ;;  %v819_v52 = vor.u32 %v818_v39, %v817_v37  ;;  %vm821_vm7 = vcmp.lt.s32.totalorder %v1934_v58, 2  ;;  %v1959_v63 = vshll.u32 %v796_v40, 8 }
  0xa6   : > { %v728_v25 = vsub.s32 %v724_v28, %v727_v7  ;;  %v828_v50 = vsel %vm820_vm4, %v1942_v48, %v1944_v56  ;;  %v423_v16 = vor.u32 4788187, %v422_v3  ;;  %v832_v6 = vsel %vm820_vm4, %v1944_v56, %v813_v32 }
  0xa7   : > { %v829_v0 = vsel %vm823_vm6, %v816_v60, 920167782  ;;  %v582_v28 = vand.u32 2147483647, %v581_v8  ;;  %v584_v13 = vcvt.s32.f32 %v577_v62  ;;  %v720_v46 = vadd.s32 %v1907_v10, %v1905_v17 }
  0xa8   : > { %vm729_vm3 = vcmp.lt.s32.totalorder %v728_v25, 0  ;;  %v730_v24 = vsub.s32 0, %v728_v25  ;;  %v830_v4 = vsel %vm822_vm5, %v813_v32, %v829_v0  ;;  %v833_v26 = vsel %vm823_vm6, %v819_v52, 1326507024 }
  0xa9   : > { %v831_v5 = vsel %vm821_vm7, %v828_v50, %v830_v4  ;;  %v834_v57 = vsel %vm822_vm5, %v816_v60, %v833_v26  ;;  %v837_v61 = vand.u32 65535, %v1959_v63  ;;  %v838_v21 = vshrl.u32 %v1959_v63, 16 }
  0xaa   : > { %v731_v1 = vsel %vm729_vm3, %v730_v24, %v728_v25  ;;  %v835_v27 = vsel %vm821_vm7, %v832_v6, %v834_v57  ;;  %v861_v38 = vand.u32 65535, %v831_v5  ;;  %v862_v42 = vshrl.u32 %v831_v5, 16 }
  0xab   : > { %v732_v41 = vclz %v731_v1  ;;  %v424_v10 = vand.u32 2147483647, %v423_v16  ;;  %v426_v47 = vcvt.s32.f32 %v419_v2  ;;  %v839_v54 = vand.u32 65535, %v835_v27 }
  0xac   : > { %v585_v7 = vmul.f32 %v584_v13, %v582_v28  ;;  %v840_v53 = vshrl.u32 %v835_v27, 16  ;;  %v804_v31 = vshrl.u32 %v1430_v33, %v1920_v36  ;;  %v864_v35 = vmul.u32 %v862_v42, %v837_v61 }
  0xad   : > { %v1118_v18 = vadd.s32 4294967294, %v732_v41  ;;  %v843_v29 = vmul.u32 %v839_v54, %v838_v21  ;;  %v865_v9 = vmul.u32 %v861_v38, %v838_v21  ;;  %v841_v37 = vmul.u32 %v839_v54, %v837_v61 }
  0xae   : > { %v842_v39 = vmul.u32 %v840_v53, %v837_v61  ;;  %v427_v24 = vmul.f32 %v426_v47, %v424_v10  ;;  %v867_v3 = vshll.u32 %v864_v35, 16  ;;  %v844_v8 = vmul.u32 %v840_v53, %v838_v21 }
  0xaf   : > { %vm1119_vm8 = vcmp.lt.s32.totalorder %v1118_v18, 0  ;;  %v847_v52 = vshll.u32 %v843_v29, 16  ;;  %v586_v41 = vxor.u32 2147483648, %v585_v7  ;;  %v824_v50 = vsel %vm820_vm4, %v804_v31, %v1942_v48 }
  0xb0   : > { %v735_v34 = vsel %vm1119_vm8, 0, %v1118_v18  ;;  %v845_v1 = vshll.u32 %v842_v39, 16  ;;  %v866_v33 = vmul.u32 %v862_v42, %v838_v21  ;;  %v869_v36 = vshll.u32 %v865_v9, 16 }
  0xb1   : > { %v736_v30 = vsub.s32 32, %v735_v34  ;;  %v737_v43 = vshll.u32 %v728_v25, %v735_v34  ;;  %v740_v17 = vsub.s32 4294967266, %v735_v34  ;;  %v863_v25 = vmul.u32 %v861_v38, %v837_v61 }
  0xb2   : > { %v825_v2 = vsel %vm823_vm6, %v813_v32, 2102212464  ;;  %vm849_vm9 = vc.u32 %v841_v37, %v845_v1  ;;  %v851_v4 = vadd.s32 %v845_v1, %v841_v37  ;;  %v846_v6 = vshrl.u32 %v842_v39, 16 }
  0xb3   : > { %v738_v49 = vshrl.u32 %v720_v46, %v736_v30  ;;  %v741_v51 = vadd.s32 127, %v740_v17  ;;  %v850_v18 = vsel %vm849_vm9, 1, %v1436_v59  ;;  %vm871_vm10 = vc.u32 %v863_v25, %v867_v3 }
  0xb4   : > { %v873_v5 = vadd.s32 %v867_v3, %v863_v25  ;;  %v852_v28 = vadd.s32 %v850_v18, %v844_v8  ;;  %vm853_vm11 = vc.u32 %v851_v4, %v847_v52  ;;  %v872_v13 = vsel %vm871_vm10, 1, %v1436_v59 }
  0xb5   : > { %v739_v40 = vor.u32 %v738_v49, %v737_v43  ;;  %v742_v60 = vshll.u32 %v741_v51, 23  ;;  %v854_v48 = vsel %vm853_vm11, 1, %v1436_v59  ;;  %v868_v46 = vshrl.u32 %v864_v35, 16 }
  0xb6   : > { %v874_v26 = vadd.s32 %v872_v13, %v866_v33  ;;  %vm875_vm12 = vc.u32 %v873_v5, %v869_v36  ;;  %v826_v32 = vsel %vm822_vm5, %v1944_v56, %v825_v2  ;;  %v848_v57 = vshrl.u32 %v843_v29, 16 }
  0xb7   : > { %v743_v62 = vor.u32 4788187, %v742_v60  ;;  %v746_v0 = vcvt.s32.f32 %v739_v40  ;;  %v856_v61 = vadd.s32 %v854_v48, %v852_v28  ;;  %v876_v21 = vsel %vm875_vm12, 1, %v1436_v59 }
  0xb8   : > { %vm466_vm13 = vcmp.lt.s32.totalorder %v1617_v12, 0  ;;  %v870_v27 = vshrl.u32 %v865_v9, 16  ;;  %v878_v38 = vadd.s32 %v876_v21, %v874_v26  ;;  %v877_v30 = vadd.s32 %v873_v5, %v869_v36 }
  0xb9   : > { %v744_v16 = vand.u32 2147483647, %v743_v62  ;;  %v857_v42 = vadd.s32 %v856_v61, %v846_v6  ;;  %v428_v43 = vxor.u32 2147483648, %v427_v24  ;;  %v827_v17 = vsel %vm821_vm7, %v824_v50, %v826_v32 }
  0xba   : > { %v879_v10 = vadd.s32 %v878_v38, %v868_v46  ;;  %vm308_vm14 = vcmp.lt.s32.totalorder %v1614_v11, 0  ;;  %vm1998_vm15 = vcmp.le.f32.partialorder %v464_v20, 0.7853982  ;;  %v587_v59 = vsel %vm466_vm13, %v586_v41, %v585_v7 }
  0xbb   : > { %v747_v34 = vmul.f32 %v746_v0, %v744_v16  ;;  %v858_v47 = vadd.s32 %v857_v42, %v848_v57  ;;  %vm628_vm0 = vcmp.lt.s32.totalorder %v1625_v22, 0  ;;  %v881_v58 = vmul.u32 %v1959_v63, %v827_v17 }
  0xbc   : > { %v880_v49 = vadd.s32 %v879_v10, %v870_v27  ;;  %vm2008_vm2 = vcmp.le.f32.partialorder %v306_v15, 0.7853982  ;;  %v429_v20 = vsel %vm308_vm14, %v428_v43, %v427_v24  ;;  %v2017_v7 = vsel %vm1998_vm15, %v1617_v12, %v587_v59 }
  0xbd   : > { %v748_v54 = vxor.u32 2147483648, %v747_v34  ;;  %vm883_vm1 = vc.u32 %v858_v47, %v877_v30  ;;  %vm2021_vm3 = vcmp.le.f32.partialorder %v626_v23, 0.7853982  ;;  %v2030_v29 = vsel %vm2008_vm2, %v1614_v11, %v429_v20 }
  0xbe   : > { %v884_v53 = vadd.s32 1, %v880_v49  ;;  %v592_v35 = vmul.f32 %v2017_v7, %v2017_v7  ;;  %v434_v60 = vmul.f32 %v2030_v29, %v2030_v29  ;;  %v430_v5 = vsub.s32 4, %v1847_v14 }
  0xbf   : > { %v749_v15 = vsel %vm628_vm0, %v748_v54, %v747_v34  ;;  %v588_v28 = vsub.s32 4, %v1850_v45  ;;  %v882_v61 = vadd.s32 %v877_v30, %v858_v47  ;;  %vm790_vm6 = vcmp.lt.s32.totalorder %v1896_v44, 0 }
  0xc0   : > { %v885_v31 = vsel %vm883_vm1, %v884_v53, %v880_v49  ;;  %v2037_v23 = vsel %vm2021_vm3, %v1625_v22, %v749_v15  ;;  %v600_v37 = vmul.f32 -0.00019511016, %v592_v35  ;;  %v442_v3 = vmul.f32 -0.00019511016, %v434_v60 }
  0xc1   : > { %v886_v9 = vadd.s32 %v885_v31, %v881_v58  ;;  %v2045_v24 = vmul.f32 %v2037_v23, %v2037_v23  ;;  %v593_v62 = vmul.f32 -0.001358992, %v592_v35  ;;  %v435_v41 = vmul.f32 -0.001358992, %v434_v60 }
  0xc2   : > { %v601_v8 = vadd.f32 0.008332121, %v600_v37  ;;  %v443_v33 = vadd.f32 0.008332121, %v442_v3  ;;  %v431_v21 = vsel %vm308_vm14, %v430_v5, %v1847_v14  ;;  %v589_v27 = vsel %vm466_vm13, %v588_v28, %v1850_v45 }
  0xc3   : > { %v887_v40 = vadd.s32 536870912, %v886_v9  ;;  %v762_v52 = vmul.f32 -0.00019511016, %v2045_v24  ;;  %v594_v36 = vadd.f32 0.041655596, %v593_v62  ;;  %v750_v49 = vsub.s32 4, %v1922_v55 }
  0xc4   : > { %v602_v0 = vmul.f32 %v601_v8, %v592_v35  ;;  %v755_v2 = vmul.f32 -0.001358992, %v2045_v24  ;;  %v436_v6 = vadd.f32 0.041655596, %v435_v41  ;;  %v444_v13 = vmul.f32 %v443_v33, %v434_v60 }
  0xc5   : > { %v2041_v39 = vshrl.u32 %v887_v40, 30  ;;  %v763_v16 = vadd.f32 0.008332121, %v762_v52  ;;  %v595_v46 = vmul.f32 %v594_v36, %v592_v35  ;;  %v433_v14 = vsel %vm2008_vm2, 0, %v431_v21 }
  0xc6   : > { %v603_v26 = vadd.f32 -0.16666654, %v602_v0  ;;  %v756_v32 = vadd.f32 0.041655596, %v755_v2  ;;  %v437_v34 = vmul.f32 %v436_v6, %v434_v60  ;;  %v445_v42 = vadd.f32 -0.16666654, %v444_v13 }
  0xc7   : > { %v889_v25 = vshll.u32 %v2041_v39, 30  ;;  %v764_v57 = vmul.f32 %v763_v16, %v2045_v24  ;;  %v596_v59 = vadd.f32 -0.4999988, %v595_v46  ;;  %v591_v45 = vsel %vm1998_vm15, 0, %v589_v27 }
  0xc8   : > { %v604_v54 = vmul.f32 %v603_v26, %v592_v35  ;;  %v757_v30 = vmul.f32 %v756_v32, %v2045_v24  ;;  %v438_v53 = vadd.f32 -0.4999988, %v437_v34  ;;  %v446_v15 = vmul.f32 %v445_v42, %v434_v60 }
  0xc9   : > { %v890_v1 = vsub.s32 %v886_v9, %v889_v25  ;;  %v765_v47 = vadd.f32 -0.16666654, %v764_v57  ;;  %v597_v40 = vmul.f32 %v596_v59, %v592_v35  ;;  %v751_v25 = vsel %vm628_vm0, %v750_v49, %v1922_v55 }
  0xca   : > { %v605_v37 = vadd.f32 1.0, %v604_v54  ;;  %v758_v3 = vadd.f32 -0.4999988, %v757_v30  ;;  %v608_v62 = vadd.s32 3, %v591_v45  ;;  %v450_v52 = vadd.s32 3, %v433_v14 }
  0xcb   : > { %vm891_vm4 = vcmp.lt.s32.totalorder %v890_v1, 0  ;;  %v892_v50 = vsub.s32 0, %v890_v1  ;;  %v766_v8 = vmul.f32 %v765_v47, %v2045_v24  ;;  %v439_v41 = vmul.f32 %v438_v53, %v434_v60 }
  0xcc   : > { %v753_v56 = vsel %vm2021_vm3, 0, %v751_v25  ;;  %v447_v33 = vadd.f32 1.0, %v446_v15  ;;  %v598_v36 = vadd.f32 1.0, %v597_v40  ;;  %v606_v35 = vmul.f32 %v605_v37, %v2017_v7 }
  0xcd   : > { %v893_v4 = vsel %vm891_vm4, %v892_v50, %v890_v1  ;;  %v759_v0 = vmul.f32 %v758_v3, %v2045_v24  ;;  %v609_v2 = vand.u32 3, %v608_v62  ;;  %v767_v55 = vadd.f32 1.0, %v766_v8  ;;  %v1115_v62 = vld [vmem:[%s2094_s20 + $0x8] sm:$0xff] }
  0xce   : > { %v894_v18 = vclz %v893_v4  ;;  %v451_v16 = vand.u32 3, %v450_v52  ;;  %v912_v5 = vsub.s32 4, %v2041_v39  ;;  %v440_v60 = vadd.f32 1.0, %v439_v41 }
  0xcf   : > { %vm2077_vm7 = vcmp.le.f32.partialorder %v788_v19, 0.7853982  ;;  %v448_v7 = vmul.f32 %v447_v33, %v2030_v29  ;;  %v612_v24 = vxor.u32 2147483648, %v606_v35  ;;  %v615_v28 = vxor.u32 2147483648, %v598_v36  ;;  %v1120_v33 = vld [vmem:[%s2094_s20 + $0x10] sm:$0xff] }
  0xd0   : > { %v1123_v48 = vadd.s32 4294967294, %v894_v18  ;;  %v770_v18 = vadd.s32 3, %v753_v56  ;;  %v760_v13 = vadd.f32 1.0, %v759_v0  ;;  %vm611_vm8 = vcmp.eq.s32.totalorder %v609_v2, 0 }
  0xd1   : > { %vm614_vm9 = vcmp.eq.s32.totalorder %v609_v2, 2  ;;  %vm453_vm10 = vcmp.eq.s32.totalorder %v451_v16, 0  ;;  %v913_v32 = vsel %vm790_vm6, %v912_v5, %v2041_v39  ;;  %vm456_vm11 = vcmp.eq.s32.totalorder %v451_v16, 2 }
  0xd2   : > { %vm1124_vm5 = vcmp.lt.s32.totalorder %v1123_v48, 0  ;;  %v771_v26 = vand.u32 3, %v770_v18  ;;  %v457_v57 = vxor.u32 2147483648, %v440_v60  ;;  %vm610_vm12 = vcmp.lt.s32.totalorder %v609_v2, 2 }
  0xd3   : > { %v897_v38 = vsel %vm1124_vm5, 0, %v1123_v48  ;;  %v768_v48 = vmul.f32 %v767_v55, %v2037_v23  ;;  %v613_v21 = vsel %vm611_vm8, %v598_v36, %v612_v24  ;;  %v616_v34 = vsel %vm614_vm9, %v615_v28, %v606_v35 }
  0xd4   : > { %v898_v43 = vsub.s32 32, %v897_v38  ;;  %v899_v17 = vshll.u32 %v890_v1, %v897_v38  ;;  %v902_v10 = vsub.s32 4294967266, %v897_v38  ;;  %v777_v27 = vxor.u32 2147483648, %v760_v13 }
  0xd5   : > { %v774_v38 = vxor.u32 2147483648, %v768_v48  ;;  %v915_v23 = vsel %vm2077_vm7, 0, %v913_v32  ;;  %vm452_vm13 = vcmp.lt.s32.totalorder %v451_v16, 2  ;;  %vm773_vm14 = vcmp.eq.s32.totalorder %v771_v26, 0 }
  0xd6   : > { %v900_v58 = vshrl.u32 %v882_v61, %v898_v43  ;;  %v903_v20 = vadd.s32 127, %v902_v10  ;;  %v454_v61 = vxor.u32 2147483648, %v448_v7  ;;  %vm776_vm15 = vcmp.eq.s32.totalorder %v771_v26, 2 }
  0xd7   : > { %v458_v39 = vsel %vm456_vm11, %v457_v57, %v448_v7  ;;  %vm607_vm0 = vweird.f32 %v1617_v12  ;;  %v617_v54 = vsel %vm610_vm12, %v613_v21, %v616_v34  ;;  %vm772_vm1 = vcmp.lt.s32.totalorder %v771_v26, 2  ;;  %v461_v12 = vld [vmem:[%s2094_s20] sm:$0xff] }
  0xd8   : > { %v901_v31 = vor.u32 %v900_v58, %v899_v17  ;;  %v904_v9 = vshll.u32 %v903_v20, 23  ;;  %v455_v59 = vsel %vm453_vm10, %v440_v60, %v454_v61  ;;  %v932_v49 = vadd.s32 3, %v915_v23 }
  0xd9   : > { %v775_v30 = vsel %vm773_vm14, %v760_v13, %v774_v38  ;;  %v778_v47 = vsel %vm776_vm15, %v777_v27, %v768_v48  ;;  %vm449_vm2 = vweird.f32 %v1614_v11  ;;  %v618_v14 = vsel %vm607_vm0, nan, %v617_v54 }
  0xda   : > { %v905_v1 = vor.u32 4788187, %v904_v9  ;;  %v908_v51 = vcvt.s32.f32 %v901_v31  ;;  %v459_v15 = vsel %vm452_vm13, %v455_v59, %v458_v39  ;;  %vm769_vm3 = vweird.f32 %v1625_v22 }
  0xdb   : > { %v779_v31 = vsel %vm772_vm1, %v775_v30, %v778_v47  ;;  %v933_v9 = vand.u32 3, %v932_v49  ;;  %v619_v25 = vmul.f32 %v618_v14, %v461_v12  ;;  %v460_v3 = vsel %vm449_vm2, nan, %v459_v15 }
  0xdc   : > { %v906_v50 = vand.u32 2147483647, %v905_v1  ;;  %v780_v8 = vsel %vm769_vm3, nan, %v779_v31 }
  0xdd   : > { %vm938_vm4 = vcmp.eq.s32.totalorder %v933_v9, 2  ;;  %v620_v41 = vadd.f32 %v619_v25, %v460_v3  ;;  %v781_v56 = vmul.f32 %v1115_v62, %v780_v8  ;;  %vm935_vm5 = vcmp.eq.s32.totalorder %v933_v9, 0 }
  0xde   : > { %v909_v4 = vmul.f32 %v908_v51, %v906_v50 }
  0xdf   : > { %v782_v35 = vadd.f32 %v781_v56, %v620_v41 }
  0xe0   : > { %v910_v6 = vxor.u32 2147483648, %v909_v4 }
  0xe2   : > { %v911_v46 = vsel %vm790_vm6, %v910_v6, %v909_v4  ;;  %vm934_vm6 = vcmp.lt.s32.totalorder %v933_v9, 2 }
  0xe3   : > { %v914_v19 = vsel %vm2077_vm7, %v1896_v44, %v911_v46  ;;  %vm931_vm7 = vweird.f32 %v1896_v44 }
  0xe4   : > { %v916_v29 = vmul.f32 %v914_v19, %v914_v19 }
  0xe6   : > { %v917_v42 = vmul.f32 -0.001358992, %v916_v29  ;;  %v924_v43 = vmul.f32 -0.00019511016, %v916_v29 }
  0xe8   : > { %v918_v17 = vadd.f32 0.041655596, %v917_v42  ;;  %v925_v10 = vadd.f32 0.008332121, %v924_v43 }
  0xea   : > { %v919_v58 = vmul.f32 %v918_v17, %v916_v29  ;;  %v926_v20 = vmul.f32 %v925_v10, %v916_v29 }
  0xec   : > { %v920_v45 = vadd.f32 -0.4999988, %v919_v58  ;;  %v927_v53 = vadd.f32 -0.16666654, %v926_v20 }
  0xee   : > { %v921_v40 = vmul.f32 %v920_v45, %v916_v29  ;;  %v928_v37 = vmul.f32 %v927_v53, %v916_v29 }
  0xf0   : > { %v922_v1 = vadd.f32 1.0, %v921_v40  ;;  %v929_v11 = vadd.f32 1.0, %v928_v37 }
  0xf2   : > { %v930_v51 = vmul.f32 %v929_v11, %v914_v19  ;;  %v939_v52 = vxor.u32 2147483648, %v922_v1 }
  0xf4   : > { %v936_v22 = vxor.u32 2147483648, %v930_v51  ;;  %v940_v50 = vsel %vm938_vm4, %v939_v52, %v930_v51 }
  0xf6   : > { %v937_v36 = vsel %vm935_vm5, %v922_v1, %v936_v22 }
  0xf7   : > { %v941_v0 = vsel %vm934_vm6, %v937_v36, %v940_v50 }
  0xf8   : > { %v942_v2 = vsel %vm931_vm7, nan, %v941_v0 }
  0xf9   : > { %v943_v55 = vmul.f32 %v1120_v33, %v942_v2 }
  0xfb   : > { %v944_v4 = vadd.f32 %v943_v55, %v782_v35 }
  0xfd   : > { %945 = vst [vmem:[%s292_s21] sm:$0xff] %v944_v4 }
  0xfe   : > { %1350 = shalt.err (!%p1347_p11)
}
  0xff   : > { %1141 = dma.vmem_to_hbm [thread:$0]  (%p1526_p9), %s962_s11, 128, %s964_s24, %s947_s29  }
 0x100 PF: > { %s2191_s22 = sld [smem:[#allocation14_spill]] }
 0x101   : > { %s2192_s2 = sld [smem:[#allocation12_spill]] }
 0x106   : > { %p1158_p13 = scmp.ge.s32.totalorder %s2191_s22, 2 }
 0x107   : > { %s975_s12 = sand.u32 1, %s2192_s2  }
 0x108   : > { %p1154_p0 = pnand %p1158_p13, %p1532_p12  ;;  %s976_s19 = scalar_lea.sflag [#allocation4], %s975_s12 }
 0x10a   : > { %p1155_p1 = pneg %p1154_p0 }
 0x10c   : > { %1392 = dma.done.wait (%p1155_p1), %s976_s19, 128  }
 0x10d   : > { %1394 = vsyncadd (%p1155_p1), %s976_s19, 4294967168  ;;  %s22_s19 = sadd.s32 1, %s2191_s22   ;;  %s2194_s28 = sld [smem:[#allocation13_spill]] }
 0x10e   : > { %p19_p2 = scmp.ge.s32.totalorder %s22_s19, 6   ;;  %s2195_s14 = sld [smem:[#allocation19_spill]] }
 0x10f   : > { %s2196_s4 = sld [smem:[#allocation15_spill]]  ;;  %s2198_s12 = smov %s1401_s13 }
 0x110   : > { %s2197_s20 = sld [smem:[#allocation16_spill]]  ;;  %s2200_s15 = smov %s1417_s17 }
 0x111   : > { %s2201_s16 = smov %s1421_s18 }
 0x112   :  { %21 = sbr.rel (!%p19_p2) target bundleno = 12 (0xc), region = 105 }
 0x113   : > { %s2199_s13 = smov %s2194_s28 }
 0x115   : > { %s2202_s17 = smov %s2196_s4 }
 0x116   : > { %s2203_s18 = smov %s2197_s20 }
 0x117   :  { %982 = vsyncpa [#allocation3], 1 }
 0x118   :  { %984 = vsyncpa [#allocation3 + $0x1], 1 }
 0x119   :  { %985 = vsyncpa [#allocation6], 1 }
 0x11a   :  { %987 = vsyncpa [#allocation6 + $0x1], 1 }
 0x11b   :  { %988 = vsyncpa [#allocation4], 1 }
 0x11c   :  { %990 = vsyncpa [#allocation4 + $0x1], 1 }

</bundles_post_ra>
